<compile_context>
chip_gen: v7x
topology: tpu7x:2x2x1
jax: 0.10.0
libtpu: 0.0.40
codegen_flags: <defaults>
</compile_context>

<pallas_src>
import functools

import jax
import jax.numpy as jnp
from jax.experimental import pallas as pl
from jax.experimental.pallas import tpu as pltpu


LANE_PAD = 128  # pad all output/hidden feature dims to a full 128-lane width


# ----------------------------- fused kernel ---------------------------------

def _gcn_fused_kernel(a_ref, h_ref, w_ref, b_ref, out_ref, *, num_layers, in_dim):
    """Everything resident in VMEM; intermediates live in vregs only.

    a_ref:   [N, N]          normalized adjacency A_hat
    h_ref:   [N, in_dim]     input features (K not padded to 128)
    w_ref:   [L, 128, 128]   packed, zero-padded weights
    b_ref:   [8, 128]        packed, zero-padded biases (rows 0..L-1 used)
    out_ref: [N, 128]        padded logits (lane-dense unmasked stores)
    """
    h = h_ref[...]          # [N, in_dim]
    b_all = b_ref[...]      # [8, 128]

    for li in range(num_layers):
        w = w_ref[li]                       # [128, 128]
        if li == 0 and in_dim != w.shape[0]:
            w = w[:in_dim, :]               # static slice, keeps K = in_dim
        hw = jnp.dot(h, w, preferred_element_type=jnp.float32)
        # Stream A_hat from VMEM per layer (don't hold it live across layers).
        h = jnp.dot(a_ref[...], hw, preferred_element_type=jnp.float32)
        h = h + b_all[li:li + 1, :]
        if li < num_layers - 1:
            h = jnp.maximum(h, 0.0)

    out_ref[...] = h


# ----------------------------- one-time precompute ---------------------------

def _pad2(x, rows, cols):
    r, c = x.shape
    return jnp.pad(x, ((0, rows - r), (0, cols - c)))


def gcn_precompute(adj_dense, norm, weights, biases, pad=LANE_PAD):
    """Hoisted constant prep (run once, not per forward call).

    Returns:
      a_hat:    [N, N]     diag(norm) @ A @ diag(norm)
      w_packed: [L, pad, pad]   zero-padded weights, stacked
      b_packed: [8, pad]        zero-padded biases, rows 0..L-1 used
    """
    num_nodes = adj_dense.shape[0]
    a_hat = (norm * adj_dense) * norm.reshape(1, num_nodes)

    n_layers = len(weights)
    w_packed = jnp.stack([_pad2(w.astype(jnp.float32), pad, pad) for w in weights])

    b_rows = max(8, ((n_layers + 7) // 8) * 8)
    b_packed = jnp.zeros((b_rows, pad), jnp.float32)
    for li, b in enumerate(biases):
        b_packed = b_packed.at[li, :b.shape[0]].set(b.astype(jnp.float32))

    return a_hat, w_packed, b_packed


# ----------------------------- jitted forward --------------------------------

@functools.partial(jax.jit, static_argnames=("n_classes",))
def gcn_forward(features, a_hat, w_packed, b_packed, *, n_classes):
    """Fused GCN forward.  ReLU on all layers except the last (matches module)."""
    num_nodes, in_dim_raw = features.shape
    n_layers, _, pad = w_packed.shape
    b_rows = b_packed.shape[0]

    # Per-call: pad the feature K dim to a sublane multiple only (no-op at 16).
    in_dim = ((in_dim_raw + 7) // 8) * 8
    h0 = jnp.pad(features, ((0, 0), (0, in_dim - in_dim_raw)))

    # Advisory cost estimate for XLA scheduling around the custom call.
    flops = 0
    for li in range(n_layers):
        k = in_dim if li == 0 else pad
        flops += 2 * num_nodes * k * pad            # H @ W
        flops += 2 * num_nodes * num_nodes * pad    # A_hat @ (H @ W)
    bytes_accessed = 4 * (num_nodes * num_nodes + num_nodes * in_dim +
                          n_layers * pad * pad + b_rows * pad + num_nodes * pad)

    full = lambda shape: pl.BlockSpec(shape, lambda i: (0,) * len(shape))

    out_padded = pl.pallas_call(
        functools.partial(_gcn_fused_kernel, num_layers=n_layers, in_dim=in_dim),
        out_shape=jax.ShapeDtypeStruct((num_nodes, pad), jnp.float32),
        grid=(1,),
        in_specs=[
            full((num_nodes, num_nodes)),     # A_hat
            full((num_nodes, in_dim)),        # H0 (K not lane-padded)
            full((n_layers, pad, pad)),       # packed weights
            full((b_rows, pad)),              # packed biases
        ],
        out_specs=full((num_nodes, pad)),
        cost_estimate=pl.CostEstimate(flops=flops, transcendentals=0,
                                      bytes_accessed=bytes_accessed),
        compiler_params=pltpu.CompilerParams(
            dimension_semantics=("arbitrary",)),
    )(a_hat, h0, w_packed, b_packed)

    return out_padded[:, :n_classes]


# ----------------------------- reference ------------------------------------

def gcn_reference(features, adj_dense, norm, weights, biases):
    """Un-fused, un-padded reference with the ORIGINAL per-layer norm algebra."""
    h = features
    n_layers = len(weights)
    hi = jax.lax.Precision.HIGHEST
    for li in range(n_layers):
        h = jnp.dot(h * norm, weights[li], precision=hi)
        h = jnp.dot(adj_dense, h, precision=hi)
        h = h * norm + biases[li][None, :]
        if li < n_layers - 1:
            h = jnp.maximum(h, 0.0)
    return h


# ----------------------------- main -----------------------------------------

if __name__ == "__main__":
    # Small synthetic graph + GCN dims (GCN(g, n_infeat, n_hidden, n_classes,
    # n_layers=2, activation=relu) -> 3 GraphConv layers).
    num_nodes = 128
    n_infeat = 16
    n_hidden = 32
    n_classes = 16
    n_layers = 2  # -> total 3 GraphConv layers

    key = jax.random.PRNGKey(0)
    k_feat, k_adj, *k_w = jax.random.split(key, 2 + (n_layers + 1))

    # Deterministic synthetic symmetric adjacency (densified CSR stand-in).
    rand = jax.random.uniform(k_adj, (num_nodes, num_nodes))
    rand = jnp.maximum(rand, rand.T)                      # symmetric
    adj_dense = (rand > 0.9).astype(jnp.float32)
    # ensure no isolated nodes: add a ring
    idx = jnp.arange(num_nodes)
    adj_dense = adj_dense.at[idx, (idx + 1) % num_nodes].set(1.0)
    adj_dense = adj_dense.at[(idx + 1) % num_nodes, idx].set(1.0)
    adj_dense = adj_dense.at[idx, idx].set(0.0)           # no self-loops

    degs = jnp.sum(adj_dense, axis=1)
    norm = jnp.power(degs, -0.5).astype(jnp.float32).reshape(num_nodes, 1)

    features = jax.random.normal(k_feat, (num_nodes, n_infeat),
                                 dtype=jnp.float32)

    # Deterministic weights / biases.
    layer_dims = [(n_infeat, n_hidden)]
    layer_dims += [(n_hidden, n_hidden)] * (n_layers - 1)
    layer_dims += [(n_hidden, n_classes)]
    weights, biases = [], []
    for li, (din, dout) in enumerate(layer_dims):
        w = jax.random.normal(k_w[li], (din, dout), dtype=jnp.float32) * 0.1
        b = jnp.full((dout,), 0.01 * (li + 1), dtype=jnp.float32)
        weights.append(w)
        biases.append(b)

    # One-time constant prep (hoisted out of the per-call path).
    a_hat, w_packed, b_packed = gcn_precompute(adj_dense, norm, weights, biases)
    a_hat, w_packed, b_packed = jax.block_until_ready(
        (a_hat, w_packed, b_packed))

    out = gcn_forward(features, a_hat, w_packed, b_packed, n_classes=n_classes)
    out = jax.block_until_ready(out)

    ref = gcn_reference(features, adj_dense, norm, weights, biases)
    assert out.shape == (num_nodes, n_classes)
    assert jnp.allclose(out, ref, atol=1e-4, rtol=1e-4), "mismatch vs reference"

    print("KERNEL_OK")
</pallas_src>

<mosaic_0001>
module attributes {stable_mosaic.version = 11 : i64} {
  func.func @_gcn_fused_kernel(%arg0: i32, %arg1: memref<128x128xf32, #tpu.memory_space<vmem>>, %arg2: memref<128x16xf32, #tpu.memory_space<vmem>>, %arg3: memref<3x128x128xf32, #tpu.memory_space<vmem>>, %arg4: memref<8x128xf32, #tpu.memory_space<vmem>>, %arg5: memref<128x128xf32, #tpu.memory_space<vmem>>) attributes {dimension_semantics = [#tpu.dimension_semantics<arbitrary>], iteration_bounds = array<i64: 1>, scalar_prefetch = 0 : i64, scratch_operands = 0 : i64, tpu.core_type = #tpu.core_type<tc>, window_params = [{pipeline_mode = #tpu.pipeline_mode<synchronous>, transform_indices = @transform_0, window_bounds = array<i64: 128, 128>}, {pipeline_mode = #tpu.pipeline_mode<synchronous>, transform_indices = @transform_1, window_bounds = array<i64: 128, 16>}, {pipeline_mode = #tpu.pipeline_mode<synchronous>, transform_indices = @transform_2, window_bounds = array<i64: 3, 128, 128>}, {pipeline_mode = #tpu.pipeline_mode<synchronous>, transform_indices = @transform_3, window_bounds = array<i64: 8, 128>}, {pipeline_mode = #tpu.pipeline_mode<synchronous>, transform_indices = @transform_4, window_bounds = array<i64: 128, 128>}]} {
    %c0 = arith.constant 0 : index
    %c0_0 = arith.constant 0 : index
    %0 = vector.load %arg2[%c0, %c0_0] : memref<128x16xf32, #tpu.memory_space<vmem>>, vector<128x16xf32>
    %c0_1 = arith.constant 0 : index
    %c0_2 = arith.constant 0 : index
    %1 = vector.load %arg4[%c0_1, %c0_2] : memref<8x128xf32, #tpu.memory_space<vmem>>, vector<8x128xf32>
    %c0_3 = arith.constant 0 : index
    %c0_4 = arith.constant 0 : index
    %c0_5 = arith.constant 0 : index
    %2 = vector.load %arg3[%c0_3, %c0_4, %c0_5] : memref<3x128x128xf32, #tpu.memory_space<vmem>>, vector<1x128x128xf32>
    %3 = vector.shape_cast %2 : vector<1x128x128xf32> to vector<128x128xf32>
    %4 = vector.extract_strided_slice %3 {offsets = [0, 0], sizes = [16, 128], strides = [1, 1]} : vector<128x128xf32> to vector<16x128xf32>
    %cst = arith.constant dense<0.000000e+00> : vector<128x128xf32>
    %5 = tpu.matmul %0, %4, %cst {dimension_numbers = #tpu.dot_dimension_numbers<[1], [0], [0], [1], [0, 0, 1, 1], [], []>} : vector<128x16xf32>, vector<16x128xf32>, vector<128x128xf32> -> vector<128x128xf32>
    %c0_6 = arith.constant 0 : index
    %c0_7 = arith.constant 0 : index
    %6 = vector.load %arg1[%c0_6, %c0_7] : memref<128x128xf32, #tpu.memory_space<vmem>>, vector<128x128xf32>
    %cst_8 = arith.constant dense<0.000000e+00> : vector<128x128xf32>
    %7 = tpu.matmul %6, %5, %cst_8 {dimension_numbers = #tpu.dot_dimension_numbers<[1], [0], [0], [1], [0, 0, 1, 1], [], []>} : vector<128x128xf32>, vector<128x128xf32>, vector<128x128xf32> -> vector<128x128xf32>
    %8 = vector.extract_strided_slice %1 {offsets = [0, 0], sizes = [1, 128], strides = [1, 1]} : vector<8x128xf32> to vector<1x128xf32>
    %9 = vector.broadcast %8 : vector<1x128xf32> to vector<128x128xf32>
    %10 = arith.addf %7, %9 : vector<128x128xf32>
    %cst_9 = arith.constant 0.000000e+00 : f32
    %11 = vector.broadcast %cst_9 : f32 to vector<128x128xf32>
    %12 = arith.maximumf %10, %11 : vector<128x128xf32>
    %c1 = arith.constant 1 : index
    %c0_10 = arith.constant 0 : index
    %c0_11 = arith.constant 0 : index
    %13 = vector.load %arg3[%c1, %c0_10, %c0_11] : memref<3x128x128xf32, #tpu.memory_space<vmem>>, vector<1x128x128xf32>
    %14 = vector.shape_cast %13 : vector<1x128x128xf32> to vector<128x128xf32>
    %cst_12 = arith.constant dense<0.000000e+00> : vector<128x128xf32>
    %15 = tpu.matmul %12, %14, %cst_12 {dimension_numbers = #tpu.dot_dimension_numbers<[1], [0], [0], [1], [0, 0, 1, 1], [], []>} : vector<128x128xf32>, vector<128x128xf32>, vector<128x128xf32> -> vector<128x128xf32>
    %c0_13 = arith.constant 0 : index
    %c0_14 = arith.constant 0 : index
    %16 = vector.load %arg1[%c0_13, %c0_14] : memref<128x128xf32, #tpu.memory_space<vmem>>, vector<128x128xf32>
    %cst_15 = arith.constant dense<0.000000e+00> : vector<128x128xf32>
    %17 = tpu.matmul %16, %15, %cst_15 {dimension_numbers = #tpu.dot_dimension_numbers<[1], [0], [0], [1], [0, 0, 1, 1], [], []>} : vector<128x128xf32>, vector<128x128xf32>, vector<128x128xf32> -> vector<128x128xf32>
    %18 = vector.extract_strided_slice %1 {offsets = [1, 0], sizes = [1, 128], strides = [1, 1]} : vector<8x128xf32> to vector<1x128xf32>
    %19 = vector.broadcast %18 : vector<1x128xf32> to vector<128x128xf32>
    %20 = arith.addf %17, %19 : vector<128x128xf32>
    %cst_16 = arith.constant 0.000000e+00 : f32
    %21 = vector.broadcast %cst_16 : f32 to vector<128x128xf32>
    %22 = arith.maximumf %20, %21 : vector<128x128xf32>
    %c2 = arith.constant 2 : index
    %c0_17 = arith.constant 0 : index
    %c0_18 = arith.constant 0 : index
    %23 = vector.load %arg3[%c2, %c0_17, %c0_18] : memref<3x128x128xf32, #tpu.memory_space<vmem>>, vector<1x128x128xf32>
    %24 = vector.shape_cast %23 : vector<1x128x128xf32> to vector<128x128xf32>
    %cst_19 = arith.constant dense<0.000000e+00> : vector<128x128xf32>
    %25 = tpu.matmul %22, %24, %cst_19 {dimension_numbers = #tpu.dot_dimension_numbers<[1], [0], [0], [1], [0, 0, 1, 1], [], []>} : vector<128x128xf32>, vector<128x128xf32>, vector<128x128xf32> -> vector<128x128xf32>
    %c0_20 = arith.constant 0 : index
    %c0_21 = arith.constant 0 : index
    %26 = vector.load %arg1[%c0_20, %c0_21] : memref<128x128xf32, #tpu.memory_space<vmem>>, vector<128x128xf32>
    %cst_22 = arith.constant dense<0.000000e+00> : vector<128x128xf32>
    %27 = tpu.matmul %26, %25, %cst_22 {dimension_numbers = #tpu.dot_dimension_numbers<[1], [0], [0], [1], [0, 0, 1, 1], [], []>} : vector<128x128xf32>, vector<128x128xf32>, vector<128x128xf32> -> vector<128x128xf32>
    %28 = vector.extract_strided_slice %1 {offsets = [2, 0], sizes = [1, 128], strides = [1, 1]} : vector<8x128xf32> to vector<1x128xf32>
    %29 = vector.broadcast %28 : vector<1x128xf32> to vector<128x128xf32>
    %30 = arith.addf %27, %29 : vector<128x128xf32>
    %c0_23 = arith.constant 0 : index
    %c0_24 = arith.constant 0 : index
    %31 = vector.load %arg5[%c0_23, %c0_24] : memref<128x128xf32, #tpu.memory_space<vmem>>, vector<128x128xf32>
    tpu.vector_store %arg5[%c0_23, %c0_24], %30 {strides = array<i32>} : memref<128x128xf32, #tpu.memory_space<vmem>>, vector<128x128xf32>,
    return
  }
  func.func @transform_0(%arg0: i32) -> (i32, i32) {
    %c0_i32 = arith.constant 0 : i32
    %c0_i32_0 = arith.constant 0 : i32
    %c0_i32_1 = arith.constant 0 : i32
    return %c0_i32, %c0_i32_0 : i32, i32
  }
  func.func @transform_1(%arg0: i32) -> (i32, i32) {
    %c0_i32 = arith.constant 0 : i32
    %c0_i32_0 = arith.constant 0 : i32
    %c0_i32_1 = arith.constant 0 : i32
    return %c0_i32, %c0_i32_0 : i32, i32
  }
  func.func @transform_2(%arg0: i32) -> (i32, i32, i32) {
    %c0_i32 = arith.constant 0 : i32
    %c0_i32_0 = arith.constant 0 : i32
    %c0_i32_1 = arith.constant 0 : i32
    %c0_i32_2 = arith.constant 0 : i32
    return %c0_i32, %c0_i32_0, %c0_i32_1 : i32, i32, i32
  }
  func.func @transform_3(%arg0: i32) -> (i32, i32) {
    %c0_i32 = arith.constant 0 : i32
    %c0_i32_0 = arith.constant 0 : i32
    %c0_i32_1 = arith.constant 0 : i32
    return %c0_i32, %c0_i32_0 : i32, i32
  }
  func.func @transform_4(%arg0: i32) -> (i32, i32) {
    %c0_i32 = arith.constant 0 : i32
    %c0_i32_0 = arith.constant 0 : i32
    %c0_i32_1 = arith.constant 0 : i32
    return %c0_i32, %c0_i32_0 : i32, i32
  }
}

</mosaic_0001>

<bundles_post_ra>
// kernel: gcn_forward.1
= control target key start
LH: loop header
LB: loop body
LE: loop exit
PB: predicated region body
PF: predicated region fallthrough
CT: control target
= control target key end

     0   :  { %9 = vsyncpa [#allocation3], 0  ;;  %s1793_s15 = smov [#allocation2]   ;;  %s2086_s0 = inlined_call_operand.vmem [shape: f32[128,128], index: 0, kind: input, shape index: {}]   ;;  %s2087_s1 = inlined_call_operand.vmem [shape: f32[128,16], index: 1, kind: input, shape index: {}]   ;;  %s2088_s2 = inlined_call_operand.hbm [shape: f32[3,128,128], index: 2, kind: input, shape index: {}]   ;;  %s2089_s3 = inlined_call_operand.vmem [shape: f32[8,128], index: 3, kind: input, shape index: {}]   ;;  %s2090_s4 = inlined_call_operand.vmem [shape: f32[128,128], index: 4, kind: output, shape index: {}]  }
   0x1   :  { %s19_s16 = sshll.u32 %s1793_s15, 4  ;;  %s1769_s19 = scalar_lea.hbm %s2088_s2, 6144  ;;  %s20_s16 = int_to_ptr.vmem [resolvable:$true] %s19_s16 }
   0x2   :  { %p1770_p0 = scmp.ne.s32.totalorder %s2088_s2, %s1769_s19  ;;  %p1773_p1 = scmp.lt.u32.totalorder %s1769_s19, %s2088_s2 }
   0x4   :  { %p1775_p2 = pnand %p1773_p1, %p1770_p0 }
   0x6   :  { %1778 = shalt.err (!%p1775_p2)
}
   0x7   :  { %s1779_s24 = scalar_lea.vmem %s20_s16, 6144  ;;  %p1784_p4 = scmp.lt.s32.totalorder %s20_s16, %s20_s16 }
   0x8   :  { %p1780_p3 = scmp.ne.s32.totalorder %s20_s16, %s1779_s24  ;;  %p1785_p5 = scmp.lt.s32.totalorder %s1779_s24, %s1779_s24 }
   0xa   :  { %p1786_p6 = por %p1785_p5, %p1784_p4 }
   0xc   :  { %p1787_p7 = pnand %p1786_p6, %p1780_p3 }
   0xe   :  { %1790 = shalt.err (!%p1787_p7)
}
   0xf   :  { %s1794_s25 = smov 128   ;;  %s1795_s26 = smov 8  }
  0x10   :  { %25 = dma.hbm_to_vmem [thread:$0]  %s2088_s2, 6144, %s20_s16, [#allocation3], %s1794_s25, %s1794_s25, %s1795_s26  }
  0x11   :  { %1791 = dma.done.wait [#allocation3], 6144  }
  0x12   :  { %1792 = vsyncadd [#allocation3], 4294961152  ;;  %vm50_vm0 = vcmask 130048   ;;  %v48_v0 = vld [vmem:[#allocation2] sm:$0xff]  ;;  %v49_v1 = vld [vmem:[#allocation2 + $0x8] sm:$0xff] }
  0x13   :  { %v31_v2 = vld [vmem:[%s2087_s1] sm:$0xff]  ;;  %v1586_v3 = vpack.c.bf16 %v49_v1, %v48_v0  ;;  %v32_v4 = vld [vmem:[%s2087_s1 + $0x8] sm:$0xff]  ;;  %v33_v5 = vld [vmem:[%s2087_s1 + $0x10] sm:$0xff] }
  0x14   :  { %1282 = vmatprep.mubr.msk.f32.mxu0 %vm50_vm0, %v31_v2  ;;  %v34_v6 = vld [vmem:[%s2087_s1 + $0x18] sm:$0xff]  ;;  %v35_v7 = vld [vmem:[%s2087_s1 + $0x20] sm:$0xff]  ;;  %v36_v8 = vld [vmem:[%s2087_s1 + $0x28] sm:$0xff] }
  0x15   :  { %1587 = vmatprep.subr.bf16.mxu0 %v1586_v3  ;;  %v37_v9 = vld [vmem:[%s2087_s1 + $0x30] sm:$0xff]  ;;  %v38_v10 = vld [vmem:[%s2087_s1 + $0x38] sm:$0xff]  ;;  %v39_v11 = vld [vmem:[%s2087_s1 + $0x40] sm:$0xff] }
  0x16   :  { %1589 = vmatpush3.bf16.msra.mxu0 %v1586_v3  ;;  %v40_v12 = vld [vmem:[%s2087_s1 + $0x48] sm:$0xff]  ;;  %v41_v13 = vld [vmem:[%s2087_s1 + $0x50] sm:$0xff]  ;;  %v42_v14 = vld [vmem:[%s2087_s1 + $0x58] sm:$0xff] }
  0x17   :  { %v43_v15 = vld [vmem:[%s2087_s1 + $0x60] sm:$0xff]  ;;  %v44_v16 = vld [vmem:[%s2087_s1 + $0x68] sm:$0xff]  ;;  %v45_v17 = vld [vmem:[%s2087_s1 + $0x70] sm:$0xff] }
  0x18   :  { %v46_v18 = vld [vmem:[%s2087_s1 + $0x78] sm:$0xff]  ;;  %v1900_v19 = vld [vmem:[%s2086_s0] sm:$0xff]  ;;  %v427_v21 = vld [vmem:[#allocation2 + $0x88] sm:$0xff] }
  0x19   :  { %1283 = vmatmul.mubr.msk.f32.vlgmr.msra.gmra.mrb[0].mxu0 %vm50_vm0, %v32_v4  ;;  %1338 = vmatprep.mubr.f32.mxu1 %v1900_v19  ;;  %v426_v20 = vld [vmem:[#allocation2 + $0x80] sm:$0xff]  ;;  %v428_v22 = vld [vmem:[#allocation2 + $0x90] sm:$0xff]  ;;  %v429_v24 = vld [vmem:[#allocation2 + $0x98] sm:$0xff] }
  0x1a   :  { %1285 = vmatprep.mubr.msk.f32.mxu0 %vm50_vm0, %v33_v5  ;;  %v1622_v23 = vpack.c.bf16 %v427_v21, %v426_v20  ;;  %v1626_v25 = vpack.c.bf16 %v429_v24, %v428_v22  ;;  %v430_v26 = vld [vmem:[#allocation2 + $0xa0] sm:$0xff]  ;;  %v431_v27 = vld [vmem:[#allocation2 + $0xa8] sm:$0xff]  ;;  %v432_v29 = vld [vmem:[#allocation2 + $0xb0] sm:$0xff]  ;;  %v260_v20 = vlaneseq }
  0x1b   :  { %v1630_v28 = vpack.c.bf16 %v431_v27, %v430_v26  ;;  %v433_v30 = vld [vmem:[#allocation2 + $0xb8] sm:$0xff]  ;;  %v434_v32 = vld [vmem:[#allocation2 + $0xc0] sm:$0xff]  ;;  %v435_v33 = vld [vmem:[#allocation2 + $0xc8] sm:$0xff] }
  0x1c   :  { %1623 = vmatprep.subr.bf16.mxu0 %v1622_v23  ;;  %v1634_v31 = vpack.c.bf16 %v433_v30, %v432_v29  ;;  %v1638_v34 = vpack.c.bf16 %v435_v33, %v434_v32  ;;  %v436_v35 = vld [vmem:[#allocation2 + $0xd0] sm:$0xff]  ;;  %v437_v36 = vld [vmem:[#allocation2 + $0xd8] sm:$0xff]  ;;  %v438_v38 = vld [vmem:[#allocation2 + $0xe0] sm:$0xff]  ;;  %v1994_v21 = vshrl.u32 %v260_v20, 7 }
  0x1d   :  { %1286 = vmatmul.mubr.msk.f32.gmra.mrb[2].mxu0 %vm50_vm0, %v34_v6  ;;  %v1642_v37 = vpack.c.bf16 %v437_v36, %v436_v35  ;;  %v439_v39 = vld [vmem:[#allocation2 + $0xe8] sm:$0xff]  ;;  %v1911_v2 = vld [vmem:[%s2086_s0 + $0x10] sm:$0xff]  ;;  %v1918_v3 = vld [vmem:[%s2086_s0 + $0x18] sm:$0xff] }
  0x1e   :  { %1288 = vmatprep.mubr.msk.f32.mxu0 %vm50_vm0, %v35_v7  ;;  %1625 = vmatpush3.bf16.msra.mxu0 %v1622_v23  ;;  %v1646_v40 = vpack.c.bf16 %v439_v39, %v438_v38  ;;  %v1906_v1 = vld [vmem:[%s2086_s0 + $0x8] sm:$0xff]  ;;  %v1923_v4 = vld [vmem:[%s2086_s0 + $0x20] sm:$0xff]  ;;  %v1935_v6 = vld [vmem:[%s2086_s0 + $0x30] sm:$0xff]  ;;  %v262_v22 = vsub.s32 0, %v1994_v21 }
  0x1f   :  { %1627 = vmatprep.subr.bf16.mxu0 %v1626_v25  ;;  %v1930_v5 = vld [vmem:[%s2086_s0 + $0x28] sm:$0xff]  ;;  %v1942_v7 = vld [vmem:[%s2086_s0 + $0x38] sm:$0xff]  ;;  %v2000_v23 = vld [vmem:[%s2089_s3] sm:$0xff] }
  0x20   :  { %v263_v24 = vrot.slane %v2000_v23, %v262_v22 }
  0x21   :  { %1289 = vmatmul.mubr.msk.f32.gmra.mrb[4].mxu0 %vm50_vm0, %v36_v8  ;;  %v1947_v8 = vld [vmem:[%s2086_s0 + $0x40] sm:$0xff] }
  0x22   :  { %1291 = vmatprep.mubr.msk.f32.mxu0 %vm50_vm0, %v37_v9  ;;  %1629 = vmatpush3.bf16.msra.mxu0 %v1626_v25  ;;  %v1954_v9 = vld [vmem:[%s2086_s0 + $0x48] sm:$0xff] }
  0x23   :  { %1631 = vmatprep.subr.bf16.mxu0 %v1630_v28 }
  0x25   :  { %1292 = vmatmul.mubr.msk.f32.gmra.mrb[6].mxu0 %vm50_vm0, %v38_v10  ;;  %v1959_v10 = vld [vmem:[%s2086_s0 + $0x50] sm:$0xff] }
  0x26   :  { %1294 = vmatprep.mubr.msk.f32.mxu0 %vm50_vm0, %v39_v11  ;;  %1633 = vmatpush3.bf16.msra.mxu0 %v1630_v28  ;;  %v1966_v11 = vld [vmem:[%s2086_s0 + $0x58] sm:$0xff] }
  0x27   :  { %1635 = vmatprep.subr.bf16.mxu0 %v1634_v31 }
  0x29   :  { %1295 = vmatmul.mubr.msk.f32.gmra.mrb[8].mxu0 %vm50_vm0, %v40_v12  ;;  %v1971_v12 = vld [vmem:[%s2086_s0 + $0x60] sm:$0xff] }
  0x2a   :  { %1297 = vmatprep.mubr.msk.f32.mxu0 %vm50_vm0, %v41_v13  ;;  %1637 = vmatpush3.bf16.msra.mxu0 %v1634_v31  ;;  %v1978_v13 = vld [vmem:[%s2086_s0 + $0x68] sm:$0xff] }
  0x2b   :  { %1639 = vmatprep.subr.bf16.mxu0 %v1638_v34 }
  0x2d   :  { %1298 = vmatmul.mubr.msk.f32.gmra.mrb[10].mxu0 %vm50_vm0, %v42_v14  ;;  %v1983_v14 = vld [vmem:[%s2086_s0 + $0x70] sm:$0xff] }
  0x2e   :  { %1300 = vmatprep.mubr.msk.f32.mxu0 %vm50_vm0, %v43_v15  ;;  %1641 = vmatpush3.bf16.msra.mxu0 %v1638_v34  ;;  %v1990_v15 = vld [vmem:[%s2086_s0 + $0x78] sm:$0xff] }
  0x2f   :  { %1643 = vmatprep.subr.bf16.mxu0 %v1642_v37 }
  0x31   :  { %1301 = vmatmul.mubr.msk.f32.gmra.mrb[12].mxu0 %vm50_vm0, %v44_v16  ;;  %v440_v16 = vld [vmem:[#allocation2 + $0xf0] sm:$0xff] }
  0x32   :  { %1303 = vmatprep.mubr.msk.f32.mxu0 %vm50_vm0, %v45_v17  ;;  %1645 = vmatpush3.bf16.msra.mxu0 %v1642_v37  ;;  %v441_v17 = vld [vmem:[#allocation2 + $0xf8] sm:$0xff] }
  0x33   :  { %1647 = vmatprep.subr.bf16.mxu0 %v1646_v40 }
  0x35   :  { %1304 = vmatmul.mubr.msk.f32.gmra.mrb[14].mxu0 %vm50_vm0, %v46_v18  ;;  %v1650_v18 = vpack.c.bf16 %v441_v17, %v440_v16 }
  0x36   :  { %1649 = vmatpush3.bf16.msra.mxu0 %v1646_v40 }
  0x37   :  { %1651 = vmatprep.subr.bf16.mxu0 %v1650_v18 }
  0x3a   :  { %1653 = vmatpush3.bf16.msra.mxu0 %v1650_v18 }
  0xec   :  { %v1284_v41 = vpop.f32.mrb[0].mxu0 }
  0xed   :  { %v165_v42 = vpop.f32.mrb[1].mxu0 }
  0xee   :  { %v1590_v43 = vpack.c.bf16 %v1284_v41, %v165_v42 }
  0xf0   :  { %v1287_v44 = vpop.f32.mrb[2].mxu0  ;;  %1591 = vmatprep.subr.bf16.mxu1 %v1590_v43 }
  0xf1   :  { %v175_v45 = vpop.f32.mrb[3].mxu0  ;;  %1593 = vmatpush3.bf16.msra.mxu1 %v1590_v43 }
  0xf2   :  { %v1594_v46 = vpack.c.bf16 %v1287_v44, %v175_v45 }
  0xf4   :  { %v1290_v47 = vpop.f32.mrb[4].mxu0  ;;  %1595 = vmatprep.subr.bf16.mxu1 %v1594_v46 }
  0xf5   :  { %v185_v48 = vpop.f32.mrb[5].mxu0  ;;  %1597 = vmatpush3.bf16.msra.mxu1 %v1594_v46 }
  0xf6   :  { %v1598_v49 = vpack.c.bf16 %v1290_v47, %v185_v48 }
  0xf8   :  { %v1293_v50 = vpop.f32.mrb[6].mxu0  ;;  %1599 = vmatprep.subr.bf16.mxu1 %v1598_v49 }
  0xf9   :  { %v195_v51 = vpop.f32.mrb[7].mxu0  ;;  %1601 = vmatpush3.bf16.msra.mxu1 %v1598_v49 }
  0xfa   :  { %v1602_v52 = vpack.c.bf16 %v1293_v50, %v195_v51 }
  0xfc   :  { %v1296_v53 = vpop.f32.mrb[8].mxu0  ;;  %1603 = vmatprep.subr.bf16.mxu1 %v1602_v52 }
  0xfd   :  { %v205_v54 = vpop.f32.mrb[9].mxu0  ;;  %1605 = vmatpush3.bf16.msra.mxu1 %v1602_v52 }
  0xfe   :  { %v1606_v55 = vpack.c.bf16 %v1296_v53, %v205_v54 }
 0x100   :  { %v1299_v56 = vpop.f32.mrb[10].mxu0  ;;  %1607 = vmatprep.subr.bf16.mxu1 %v1606_v55 }
 0x101   :  { %v215_v57 = vpop.f32.mrb[11].mxu0  ;;  %1609 = vmatpush3.bf16.msra.mxu1 %v1606_v55 }
 0x102   :  { %v1610_v58 = vpack.c.bf16 %v1299_v56, %v215_v57 }
 0x104   :  { %v1302_v59 = vpop.f32.mrb[12].mxu0  ;;  %1611 = vmatprep.subr.bf16.mxu1 %v1610_v58 }
 0x105   :  { %v225_v60 = vpop.f32.mrb[13].mxu0  ;;  %1613 = vmatpush3.bf16.msra.mxu1 %v1610_v58 }
 0x106   :  { %v1614_v61 = vpack.c.bf16 %v1302_v59, %v225_v60 }
 0x108   :  { %v1305_v62 = vpop.f32.mrb[14].mxu0  ;;  %1615 = vmatprep.subr.bf16.mxu1 %v1614_v61 }
 0x109   :  { %v235_v63 = vpop.f32.mrb[15].mxu0  ;;  %1617 = vmatpush3.bf16.msra.mxu1 %v1614_v61 }
 0x10a   :  { %v1618_v0 = vpack.c.bf16 %v1305_v62, %v235_v63 }
 0x10c   :  { %1619 = vmatprep.subr.bf16.mxu1 %v1618_v0 }
 0x10d   :  { %1621 = vmatpush3.bf16.msra.mxu1 %v1618_v0 }
 0x110   :  { %1339 = vmatmul.mubr.f32.vlgmr.msra.gmra.mrb[0].mxu1 %v1906_v1 }
 0x111   :  { %1341 = vmatprep.mubr.f32.mxu1 %v1911_v2 }
 0x114   :  { %1342 = vmatmul.mubr.f32.gmra.mrb[2].mxu1 %v1918_v3 }
 0x115   :  { %1344 = vmatprep.mubr.f32.mxu1 %v1923_v4 }
 0x118   :  { %1345 = vmatmul.mubr.f32.gmra.mrb[4].mxu1 %v1930_v5 }
 0x119   :  { %1347 = vmatprep.mubr.f32.mxu1 %v1935_v6 }
 0x11c   :  { %1348 = vmatmul.mubr.f32.gmra.mrb[6].mxu1 %v1942_v7 }
 0x11d   :  { %1350 = vmatprep.mubr.f32.mxu1 %v1947_v8 }
 0x120   :  { %1351 = vmatmul.mubr.f32.gmra.mrb[8].mxu1 %v1954_v9 }
 0x121   :  { %1353 = vmatprep.mubr.f32.mxu1 %v1959_v10 }
 0x124   :  { %1354 = vmatmul.mubr.f32.gmra.mrb[10].mxu1 %v1966_v11 }
 0x125   :  { %1356 = vmatprep.mubr.f32.mxu1 %v1971_v12 }
 0x128   :  { %1357 = vmatmul.mubr.f32.gmra.mrb[12].mxu1 %v1978_v13 }
 0x129   :  { %1359 = vmatprep.mubr.f32.mxu1 %v1983_v14 }
 0x12c   :  { %1360 = vmatmul.mubr.f32.gmra.mrb[14].mxu1 %v1990_v15 }
 0x12d   :  { %1450 = vmatprep.mubr.f32.mxu1 %v1900_v19 }
 0x1e3   :  { %v1340_v25 = vpop.f32.mrb[0].mxu1 }
 0x1e4   :  { %v336_v26 = vadd.f32 %v1340_v25, %v263_v24  ;;  %v330_v27 = vpop.f32.mrb[1].mxu1 }
 0x1e5   :  { %v331_v28 = vadd.f32 %v330_v27, %v263_v24 }
 0x1e6   :  { %v410_v31 = vmax.f32 %v336_v26, 0.0 }
 0x1e7   :  { %v409_v29 = vmax.f32 %v331_v28, 0.0  ;;  %v1343_v30 = vpop.f32.mrb[2].mxu1  ;;  %v753_v28 = vld [vmem:[#allocation2 + $0x100] sm:$0xff] }
 0x1e8   :  { %v346_v32 = vadd.f32 %v1343_v30, %v263_v24  ;;  %v340_v33 = vpop.f32.mrb[3].mxu1  ;;  %v755_v30 = vld [vmem:[#allocation2 + $0x110] sm:$0xff] }
 0x1e9   :  { %v341_v34 = vadd.f32 %v340_v33, %v263_v24  ;;  %1394 = vmatprep.mubr.f32.mxu0 %v409_v29  ;;  %v754_v29 = vld [vmem:[#allocation2 + $0x108] sm:$0xff] }
 0x1ea   :  { %1395 = vmatmul.mubr.f32.vlgmr.msra.gmra.mrb[16].mxu0 %v410_v31  ;;  %v412_v37 = vmax.f32 %v346_v32, 0.0  ;;  %v1686_v31 = vpack.c.bf16 %v754_v29, %v753_v28  ;;  %v756_v32 = vld [vmem:[#allocation2 + $0x118] sm:$0xff] }
 0x1eb   :  { %v411_v35 = vmax.f32 %v341_v34, 0.0  ;;  %v1346_v36 = vpop.f32.mrb[4].mxu1  ;;  %v1690_v33 = vpack.c.bf16 %v756_v32, %v755_v30  ;;  %v757_v34 = vld [vmem:[#allocation2 + $0x120] sm:$0xff]  ;;  %v768_v28 = vld [vmem:[#allocation2 + $0x178] sm:$0xff]  ;;  %v589_v30 = vsub.s32 1, %v1994_v21 }
 0x1ec   :  { %v356_v38 = vadd.f32 %v1346_v36, %v263_v24  ;;  %v350_v39 = vpop.f32.mrb[5].mxu1  ;;  %1687 = vmatprep.subr.bf16.mxu0 %v1686_v31 }
 0x1ed   :  { %v351_v40 = vadd.f32 %v350_v39, %v263_v24  ;;  %1397 = vmatprep.mubr.f32.mxu0 %v411_v35  ;;  %v758_v35 = vld [vmem:[#allocation2 + $0x128] sm:$0xff]  ;;  %1689 = vmatpush3.bf16.msra.mxu0 %v1686_v31  ;;  %v761_v39 = vld [vmem:[#allocation2 + $0x140] sm:$0xff]  ;;  %v590_v31 = vrot.slane %v2000_v23, %v589_v30 }
 0x1ee   :  { %1398 = vmatmul.mubr.f32.gmra.mrb[18].mxu0 %v412_v37  ;;  %v414_v43 = vmax.f32 %v356_v38, 0.0  ;;  %1691 = vmatprep.subr.bf16.mxu0 %v1690_v33  ;;  %v1694_v36 = vpack.c.bf16 %v758_v35, %v757_v34  ;;  %v759_v37 = vld [vmem:[#allocation2 + $0x130] sm:$0xff] }
 0x1ef   :  { %v413_v41 = vmax.f32 %v351_v40, 0.0  ;;  %v1349_v42 = vpop.f32.mrb[6].mxu1  ;;  %v762_v40 = vld [vmem:[#allocation2 + $0x148] sm:$0xff] }
 0x1f0   :  { %v366_v44 = vadd.f32 %v1349_v42, %v263_v24  ;;  %v360_v45 = vpop.f32.mrb[7].mxu1  ;;  %v763_v42 = vld [vmem:[#allocation2 + $0x150] sm:$0xff] }
 0x1f1   :  { %v361_v46 = vadd.f32 %v360_v45, %v263_v24  ;;  %1400 = vmatprep.mubr.f32.mxu0 %v413_v41  ;;  %1693 = vmatpush3.bf16.msra.mxu0 %v1690_v33  ;;  %v1702_v41 = vpack.c.bf16 %v762_v40, %v761_v39  ;;  %v765_v45 = vld [vmem:[#allocation2 + $0x160] sm:$0xff] }
 0x1f2   :  { %1401 = vmatmul.mubr.f32.gmra.mrb[20].mxu0 %v414_v43  ;;  %v416_v49 = vmax.f32 %v366_v44, 0.0  ;;  %1695 = vmatprep.subr.bf16.mxu0 %v1694_v36  ;;  %v764_v43 = vld [vmem:[#allocation2 + $0x158] sm:$0xff] }
 0x1f3   :  { %v415_v47 = vmax.f32 %v361_v46, 0.0  ;;  %v1352_v48 = vpop.f32.mrb[8].mxu1  ;;  %v1706_v44 = vpack.c.bf16 %v764_v43, %v763_v42  ;;  %v766_v46 = vld [vmem:[#allocation2 + $0x168] sm:$0xff] }
 0x1f4   :  { %v376_v50 = vadd.f32 %v1352_v48, %v263_v24  ;;  %v370_v51 = vpop.f32.mrb[9].mxu1 }
 0x1f5   :  { %v371_v52 = vadd.f32 %v370_v51, %v263_v24  ;;  %1403 = vmatprep.mubr.f32.mxu0 %v415_v47  ;;  %1697 = vmatpush3.bf16.msra.mxu0 %v1694_v36  ;;  %v1710_v47 = vpack.c.bf16 %v766_v46, %v765_v45 }
 0x1f6   :  { %1404 = vmatmul.mubr.f32.gmra.mrb[22].mxu0 %v416_v49  ;;  %v418_v55 = vmax.f32 %v376_v50, 0.0 }
 0x1f7   :  { %v417_v53 = vmax.f32 %v371_v52, 0.0  ;;  %v1355_v54 = vpop.f32.mrb[10].mxu1 }
 0x1f8   :  { %v386_v56 = vadd.f32 %v1355_v54, %v263_v24  ;;  %v380_v57 = vpop.f32.mrb[11].mxu1 }
 0x1f9   :  { %v381_v58 = vadd.f32 %v380_v57, %v263_v24  ;;  %1406 = vmatprep.mubr.f32.mxu0 %v417_v53 }
 0x1fa   :  { %1407 = vmatmul.mubr.f32.gmra.mrb[24].mxu0 %v418_v55  ;;  %v420_v61 = vmax.f32 %v386_v56, 0.0 }
 0x1fb   :  { %v419_v59 = vmax.f32 %v381_v58, 0.0  ;;  %v1358_v60 = vpop.f32.mrb[12].mxu1 }
 0x1fc   :  { %v396_v62 = vadd.f32 %v1358_v60, %v263_v24  ;;  %v390_v63 = vpop.f32.mrb[13].mxu1 }
 0x1fd   :  { %v391_v0 = vadd.f32 %v390_v63, %v263_v24  ;;  %1409 = vmatprep.mubr.f32.mxu0 %v419_v59 }
 0x1fe   :  { %1410 = vmatmul.mubr.f32.gmra.mrb[26].mxu0 %v420_v61  ;;  %v422_v18 = vmax.f32 %v396_v62, 0.0 }
 0x1ff   :  { %v421_v16 = vmax.f32 %v391_v0, 0.0  ;;  %v1361_v17 = vpop.f32.mrb[14].mxu1 }
 0x200   :  { %v406_v20 = vadd.f32 %v1361_v17, %v263_v24  ;;  %v400_v22 = vpop.f32.mrb[15].mxu1 }
 0x201   :  { %v401_v25 = vadd.f32 %v400_v22, %v263_v24  ;;  %1412 = vmatprep.mubr.f32.mxu0 %v421_v16  ;;  %v760_v24 = vld [vmem:[#allocation2 + $0x138] sm:$0xff] }
 0x202   :  { %1413 = vmatmul.mubr.f32.gmra.mrb[28].mxu0 %v422_v18  ;;  %v424_v27 = vmax.f32 %v406_v20, 0.0  ;;  %v1698_v38 = vpack.c.bf16 %v760_v24, %v759_v37 }
 0x203   :  { %v423_v26 = vmax.f32 %v401_v25, 0.0 }
 0x204   :  { %1699 = vmatprep.subr.bf16.mxu0 %v1698_v38 }
 0x205   :  { %1415 = vmatprep.mubr.f32.mxu0 %v423_v26  ;;  %1701 = vmatpush3.bf16.msra.mxu0 %v1698_v38 }
 0x206   :  { %1416 = vmatmul.mubr.f32.gmra.mrb[30].mxu0 %v424_v27  ;;  %1703 = vmatprep.subr.bf16.mxu0 %v1702_v41  ;;  %v767_v27 = vld [vmem:[#allocation2 + $0x170] sm:$0xff] }
 0x207   :  { %v1714_v29 = vpack.c.bf16 %v768_v28, %v767_v27 }
 0x209   :  { %1705 = vmatpush3.bf16.msra.mxu0 %v1702_v41 }
 0x20a   :  { %1707 = vmatprep.subr.bf16.mxu0 %v1706_v44 }
 0x20d   :  { %1709 = vmatpush3.bf16.msra.mxu0 %v1706_v44 }
 0x20e   :  { %1711 = vmatprep.subr.bf16.mxu0 %v1710_v47 }
 0x211   :  { %1713 = vmatpush3.bf16.msra.mxu0 %v1710_v47 }
 0x212   :  { %1715 = vmatprep.subr.bf16.mxu0 %v1714_v29 }
 0x215   :  { %1717 = vmatpush3.bf16.msra.mxu0 %v1714_v29 }
 0x2bd   :  { %v1396_v48 = vpop.f32.mrb[16].mxu0 }
 0x2be   :  { %v508_v49 = vpop.f32.mrb[17].mxu0 }
 0x2bf   :  { %v1654_v50 = vpack.c.bf16 %v1396_v48, %v508_v49 }
 0x2c1   :  { %v1399_v51 = vpop.f32.mrb[18].mxu0  ;;  %1655 = vmatprep.subr.bf16.mxu1 %v1654_v50 }
 0x2c2   :  { %v518_v52 = vpop.f32.mrb[19].mxu0  ;;  %1657 = vmatpush3.bf16.msra.mxu1 %v1654_v50 }
 0x2c3   :  { %v1658_v53 = vpack.c.bf16 %v1399_v51, %v518_v52 }
 0x2c5   :  { %v1402_v54 = vpop.f32.mrb[20].mxu0  ;;  %1659 = vmatprep.subr.bf16.mxu1 %v1658_v53 }
 0x2c6   :  { %v528_v55 = vpop.f32.mrb[21].mxu0  ;;  %1661 = vmatpush3.bf16.msra.mxu1 %v1658_v53 }
 0x2c7   :  { %v1662_v56 = vpack.c.bf16 %v1402_v54, %v528_v55 }
 0x2c9   :  { %v1405_v57 = vpop.f32.mrb[22].mxu0  ;;  %1663 = vmatprep.subr.bf16.mxu1 %v1662_v56 }
 0x2ca   :  { %v538_v58 = vpop.f32.mrb[23].mxu0  ;;  %1665 = vmatpush3.bf16.msra.mxu1 %v1662_v56 }
 0x2cb   :  { %v1666_v59 = vpack.c.bf16 %v1405_v57, %v538_v58 }
 0x2cd   :  { %v1408_v60 = vpop.f32.mrb[24].mxu0  ;;  %1667 = vmatprep.subr.bf16.mxu1 %v1666_v59 }
 0x2ce   :  { %v548_v61 = vpop.f32.mrb[25].mxu0  ;;  %1669 = vmatpush3.bf16.msra.mxu1 %v1666_v59 }
 0x2cf   :  { %v1670_v62 = vpack.c.bf16 %v1408_v60, %v548_v61 }
 0x2d1   :  { %v1411_v63 = vpop.f32.mrb[26].mxu0  ;;  %1671 = vmatprep.subr.bf16.mxu1 %v1670_v62 }
 0x2d2   :  { %v558_v0 = vpop.f32.mrb[27].mxu0  ;;  %1673 = vmatpush3.bf16.msra.mxu1 %v1670_v62 }
 0x2d3   :  { %v1674_v16 = vpack.c.bf16 %v1411_v63, %v558_v0 }
 0x2d5   :  { %v1414_v17 = vpop.f32.mrb[28].mxu0  ;;  %1675 = vmatprep.subr.bf16.mxu1 %v1674_v16 }
 0x2d6   :  { %v568_v18 = vpop.f32.mrb[29].mxu0  ;;  %1677 = vmatpush3.bf16.msra.mxu1 %v1674_v16 }
 0x2d7   :  { %v1678_v20 = vpack.c.bf16 %v1414_v17, %v568_v18 }
 0x2d9   :  { %v1417_v22 = vpop.f32.mrb[30].mxu0  ;;  %1679 = vmatprep.subr.bf16.mxu1 %v1678_v20 }
 0x2da   :  { %v578_v25 = vpop.f32.mrb[31].mxu0  ;;  %1681 = vmatpush3.bf16.msra.mxu1 %v1678_v20 }
 0x2db   :  { %v1682_v26 = vpack.c.bf16 %v1417_v22, %v578_v25 }
 0x2dd   :  { %1683 = vmatprep.subr.bf16.mxu1 %v1682_v26 }
 0x2de   :  { %1685 = vmatpush3.bf16.msra.mxu1 %v1682_v26 }
 0x2e1   :  { %1451 = vmatmul.mubr.f32.vlgmr.msra.gmra.mrb[16].mxu1 %v1906_v1 }
 0x2e2   :  { %1453 = vmatprep.mubr.f32.mxu1 %v1911_v2 }
 0x2e5   :  { %1454 = vmatmul.mubr.f32.gmra.mrb[18].mxu1 %v1918_v3 }
 0x2e6   :  { %1456 = vmatprep.mubr.f32.mxu1 %v1923_v4 }
 0x2e9   :  { %1457 = vmatmul.mubr.f32.gmra.mrb[20].mxu1 %v1930_v5 }
 0x2ea   :  { %1459 = vmatprep.mubr.f32.mxu1 %v1935_v6 }
 0x2ed   :  { %1460 = vmatmul.mubr.f32.gmra.mrb[22].mxu1 %v1942_v7 }
 0x2ee   :  { %1462 = vmatprep.mubr.f32.mxu1 %v1947_v8 }
 0x2f1   :  { %1463 = vmatmul.mubr.f32.gmra.mrb[24].mxu1 %v1954_v9 }
 0x2f2   :  { %1465 = vmatprep.mubr.f32.mxu1 %v1959_v10 }
 0x2f5   :  { %1466 = vmatmul.mubr.f32.gmra.mrb[26].mxu1 %v1966_v11 }
 0x2f6   :  { %1468 = vmatprep.mubr.f32.mxu1 %v1971_v12 }
 0x2f9   :  { %1469 = vmatmul.mubr.f32.gmra.mrb[28].mxu1 %v1978_v13 }
 0x2fa   :  { %1471 = vmatprep.mubr.f32.mxu1 %v1983_v14 }
 0x2fd   :  { %1472 = vmatmul.mubr.f32.gmra.mrb[30].mxu1 %v1990_v15 }
 0x2fe   :  { %1571 = vmatprep.mubr.f32.mxu1 %v1935_v6 }
 0x3b4   :  { %v1452_v32 = vpop.f32.mrb[16].mxu1 }
 0x3b5   :  { %v663_v33 = vadd.f32 %v1452_v32, %v590_v31  ;;  %v657_v34 = vpop.f32.mrb[17].mxu1 }
 0x3b6   :  { %v658_v35 = vadd.f32 %v657_v34, %v590_v31 }
 0x3b7   :  { %v737_v24 = vmax.f32 %v663_v33, 0.0 }
 0x3b8   :  { %v736_v36 = vmax.f32 %v658_v35, 0.0  ;;  %v1455_v37 = vpop.f32.mrb[18].mxu1 }
 0x3b9   :  { %v673_v38 = vadd.f32 %v1455_v37, %v590_v31  ;;  %v667_v39 = vpop.f32.mrb[19].mxu1 }
 0x3ba   :  { %v668_v40 = vadd.f32 %v667_v39, %v590_v31  ;;  %1506 = vmatprep.mubr.f32.mxu0 %v736_v36 }
 0x3bb   :  { %1507 = vmatmul.mubr.f32.vlgmr.msra.gmra.mrb[32].mxu0 %v737_v24  ;;  %v739_v42 = vmax.f32 %v673_v38, 0.0 }
 0x3bc   :  { %v738_v6 = vmax.f32 %v668_v40, 0.0  ;;  %v1458_v41 = vpop.f32.mrb[20].mxu1 }
 0x3bd   :  { %v683_v43 = vadd.f32 %v1458_v41, %v590_v31  ;;  %v677_v44 = vpop.f32.mrb[21].mxu1 }
 0x3be   :  { %v678_v45 = vadd.f32 %v677_v44, %v590_v31  ;;  %1509 = vmatprep.mubr.f32.mxu0 %v738_v6 }
 0x3bf   :  { %1510 = vmatmul.mubr.f32.gmra.mrb[34].mxu0 %v739_v42  ;;  %v741_v48 = vmax.f32 %v683_v43, 0.0 }
 0x3c0   :  { %v740_v46 = vmax.f32 %v678_v45, 0.0  ;;  %v1461_v47 = vpop.f32.mrb[22].mxu1 }
 0x3c1   :  { %v693_v49 = vadd.f32 %v1461_v47, %v590_v31  ;;  %v687_v50 = vpop.f32.mrb[23].mxu1 }
 0x3c2   :  { %v688_v51 = vadd.f32 %v687_v50, %v590_v31  ;;  %1512 = vmatprep.mubr.f32.mxu0 %v740_v46 }
 0x3c3   :  { %1513 = vmatmul.mubr.f32.gmra.mrb[36].mxu0 %v741_v48  ;;  %v743_v54 = vmax.f32 %v693_v49, 0.0 }
 0x3c4   :  { %v742_v52 = vmax.f32 %v688_v51, 0.0  ;;  %v1464_v53 = vpop.f32.mrb[24].mxu1 }
 0x3c5   :  { %v703_v55 = vadd.f32 %v1464_v53, %v590_v31  ;;  %v697_v56 = vpop.f32.mrb[25].mxu1 }
 0x3c6   :  { %v698_v57 = vadd.f32 %v697_v56, %v590_v31  ;;  %1515 = vmatprep.mubr.f32.mxu0 %v742_v52 }
 0x3c7   :  { %1516 = vmatmul.mubr.f32.gmra.mrb[38].mxu0 %v743_v54  ;;  %v745_v60 = vmax.f32 %v703_v55, 0.0 }
 0x3c8   :  { %v744_v58 = vmax.f32 %v698_v57, 0.0  ;;  %v1467_v59 = vpop.f32.mrb[26].mxu1 }
 0x3c9   :  { %v713_v61 = vadd.f32 %v1467_v59, %v590_v31  ;;  %v707_v62 = vpop.f32.mrb[27].mxu1 }
 0x3ca   :  { %v708_v63 = vadd.f32 %v707_v62, %v590_v31  ;;  %1518 = vmatprep.mubr.f32.mxu0 %v744_v58 }
 0x3cb   :  { %1519 = vmatmul.mubr.f32.gmra.mrb[40].mxu0 %v745_v60  ;;  %v747_v17 = vmax.f32 %v713_v61, 0.0 }
 0x3cc   :  { %v746_v0 = vmax.f32 %v708_v63, 0.0  ;;  %v1470_v16 = vpop.f32.mrb[28].mxu1 }
 0x3cd   :  { %v723_v18 = vadd.f32 %v1470_v16, %v590_v31  ;;  %v717_v20 = vpop.f32.mrb[29].mxu1 }
 0x3ce   :  { %v718_v22 = vadd.f32 %v717_v20, %v590_v31  ;;  %1521 = vmatprep.mubr.f32.mxu0 %v746_v0 }
 0x3cf   :  { %1522 = vmatmul.mubr.f32.gmra.mrb[42].mxu0 %v747_v17  ;;  %v749_v27 = vmax.f32 %v723_v18, 0.0 }
 0x3d0   :  { %v748_v25 = vmax.f32 %v718_v22, 0.0  ;;  %v1473_v26 = vpop.f32.mrb[30].mxu1 }
 0x3d1   :  { %v733_v28 = vadd.f32 %v1473_v26, %v590_v31  ;;  %v727_v29 = vpop.f32.mrb[31].mxu1 }
 0x3d2   :  { %v728_v30 = vadd.f32 %v727_v29, %v590_v31  ;;  %1524 = vmatprep.mubr.f32.mxu0 %v748_v25 }
 0x3d3   :  { %1525 = vmatmul.mubr.f32.gmra.mrb[44].mxu0 %v749_v27  ;;  %v751_v33 = vmax.f32 %v733_v28, 0.0 }
 0x3d4   :  { %v750_v32 = vmax.f32 %v728_v30, 0.0 }
 0x3d6   :  { %1527 = vmatprep.mubr.f32.mxu0 %v750_v32 }
 0x3d7   :  { %1528 = vmatmul.mubr.f32.gmra.mrb[46].mxu0 %v751_v33 }
 0x3d8   :  { %1562 = vmatprep.mubr.f32.mxu0 %v1900_v19 }
 0x48e   :  { %v1508_v34 = vpop.f32.mrb[32].mxu0 }
 0x48f   :  { %v835_v35 = vpop.f32.mrb[33].mxu0 }
 0x490   :  { %v1718_v36 = vpack.c.bf16 %v1508_v34, %v835_v35 }
 0x492   :  { %v1511_v37 = vpop.f32.mrb[34].mxu0  ;;  %1719 = vmatprep.subr.bf16.mxu0 %v1718_v36  ;;  %1750 = vmatprep.subr.bf16.mxu1 %v1718_v36 }
 0x493   :  { %v845_v24 = vpop.f32.mrb[35].mxu0  ;;  %1721 = vmatpush3.bf16.msra.mxu0 %v1718_v36  ;;  %1758 = vmatpush3.bf16.msra.mxu1 %v1718_v36 }
 0x494   :  { %v1722_v38 = vpack.c.bf16 %v1511_v37, %v845_v24 }
 0x496   :  { %v1514_v39 = vpop.f32.mrb[36].mxu0  ;;  %1723 = vmatprep.subr.bf16.mxu0 %v1722_v38  ;;  %1751 = vmatprep.subr.bf16.mxu1 %v1722_v38 }
 0x497   :  { %v855_v31 = vpop.f32.mrb[37].mxu0  ;;  %1725 = vmatpush3.bf16.msra.mxu0 %v1722_v38  ;;  %1759 = vmatpush3.bf16.msra.mxu1 %v1722_v38 }
 0x498   :  { %v1726_v40 = vpack.c.bf16 %v1514_v39, %v855_v31 }
 0x49a   :  { %v1517_v6 = vpop.f32.mrb[38].mxu0  ;;  %1727 = vmatprep.subr.bf16.mxu0 %v1726_v40  ;;  %1752 = vmatprep.subr.bf16.mxu1 %v1726_v40 }
 0x49b   :  { %v865_v19 = vpop.f32.mrb[39].mxu0  ;;  %1729 = vmatpush3.bf16.msra.mxu0 %v1726_v40  ;;  %1760 = vmatpush3.bf16.msra.mxu1 %v1726_v40 }
 0x49c   :  { %v1730_v41 = vpack.c.bf16 %v1517_v6, %v865_v19 }
 0x49e   :  { %v1520_v42 = vpop.f32.mrb[40].mxu0  ;;  %1731 = vmatprep.subr.bf16.mxu0 %v1730_v41  ;;  %1753 = vmatprep.subr.bf16.mxu1 %v1730_v41 }
 0x49f   :  { %v875_v43 = vpop.f32.mrb[41].mxu0  ;;  %1733 = vmatpush3.bf16.msra.mxu0 %v1730_v41  ;;  %1761 = vmatpush3.bf16.msra.mxu1 %v1730_v41 }
 0x4a0   :  { %v1734_v44 = vpack.c.bf16 %v1520_v42, %v875_v43 }
 0x4a2   :  { %v1523_v45 = vpop.f32.mrb[42].mxu0  ;;  %1735 = vmatprep.subr.bf16.mxu0 %v1734_v44  ;;  %1754 = vmatprep.subr.bf16.mxu1 %v1734_v44 }
 0x4a3   :  { %v885_v46 = vpop.f32.mrb[43].mxu0  ;;  %1737 = vmatpush3.bf16.msra.mxu0 %v1734_v44  ;;  %1762 = vmatpush3.bf16.msra.mxu1 %v1734_v44 }
 0x4a4   :  { %v1738_v47 = vpack.c.bf16 %v1523_v45, %v885_v46 }
 0x4a6   :  { %v1526_v48 = vpop.f32.mrb[44].mxu0  ;;  %1739 = vmatprep.subr.bf16.mxu0 %v1738_v47  ;;  %1755 = vmatprep.subr.bf16.mxu1 %v1738_v47 }
 0x4a7   :  { %v895_v49 = vpop.f32.mrb[45].mxu0  ;;  %1741 = vmatpush3.bf16.msra.mxu0 %v1738_v47  ;;  %1763 = vmatpush3.bf16.msra.mxu1 %v1738_v47 }
 0x4a8   :  { %v1742_v50 = vpack.c.bf16 %v1526_v48, %v895_v49 }
 0x4aa   :  { %v1529_v51 = vpop.f32.mrb[46].mxu0  ;;  %1743 = vmatprep.subr.bf16.mxu0 %v1742_v50  ;;  %1756 = vmatprep.subr.bf16.mxu1 %v1742_v50 }
 0x4ab   :  { %v905_v52 = vpop.f32.mrb[47].mxu0  ;;  %1745 = vmatpush3.bf16.msra.mxu0 %v1742_v50  ;;  %1764 = vmatpush3.bf16.msra.mxu1 %v1742_v50 }
 0x4ac   :  { %v1746_v53 = vpack.c.bf16 %v1529_v51, %v905_v52 }
 0x4ae   :  { %1747 = vmatprep.subr.bf16.mxu0 %v1746_v53  ;;  %1757 = vmatprep.subr.bf16.mxu1 %v1746_v53 }
 0x4af   :  { %1749 = vmatpush3.bf16.msra.mxu0 %v1746_v53  ;;  %1765 = vmatpush3.bf16.msra.mxu1 %v1746_v53 }
 0x4b2   :  { %1572 = vmatmul.mubr.f32.vlgmr.msra.gmra.mrb[32].mxu1 %v1942_v7  ;;  %1563 = vmatmul.mubr.f32.vlgmr.msra.gmra.mrb[48].mxu0 %v1906_v1  ;;  %v916_v1 = vsub.s32 2, %v1994_v21 }
 0x4b3   :  { %1574 = vmatprep.mubr.f32.mxu1 %v1947_v8  ;;  %1565 = vmatprep.mubr.f32.mxu0 %v1911_v2 }
 0x4b4   :  { %v917_v2 = vrot.slane %v2000_v23, %v916_v1 }
 0x4b6   :  { %1575 = vmatmul.mubr.f32.gmra.mrb[34].mxu1 %v1954_v9  ;;  %1566 = vmatmul.mubr.f32.gmra.mrb[50].mxu0 %v1918_v3 }
 0x4b7   :  { %1577 = vmatprep.mubr.f32.mxu1 %v1959_v10  ;;  %1568 = vmatprep.mubr.f32.mxu0 %v1923_v4 }
 0x4ba   :  { %1578 = vmatmul.mubr.f32.gmra.mrb[36].mxu1 %v1966_v11  ;;  %1569 = vmatmul.mubr.f32.gmra.mrb[52].mxu0 %v1930_v5 }
 0x4bb   :  { %1580 = vmatprep.mubr.f32.mxu1 %v1971_v12 }
 0x4be   :  { %1581 = vmatmul.mubr.f32.gmra.mrb[38].mxu1 %v1978_v13 }
 0x4bf   :  { %1583 = vmatprep.mubr.f32.mxu1 %v1983_v14 }
 0x4c2   :  { %1584 = vmatmul.mubr.f32.gmra.mrb[40].mxu1 %v1990_v15 }
 0x585   :  { %v1573_v3 = vpop.f32.mrb[32].mxu1  ;;  %v1564_v7 = vpop.f32.mrb[48].mxu0 }
 0x586   :  { %v1020_v8 = vadd.f32 %v1573_v3, %v917_v2  ;;  %v1014_v4 = vpop.f32.mrb[33].mxu1  ;;  %v990_v9 = vadd.f32 %v1564_v7, %v917_v2  ;;  %v984_v10 = vpop.f32.mrb[49].mxu0 }
 0x587   :  { %v1015_v11 = vadd.f32 %v1014_v4, %v917_v2  ;;  %v985_v5 = vadd.f32 %v984_v10, %v917_v2 }
 0x588   :  { %1070 = vst [vmem:[%s2090_s4 + $0x38] sm:$0xff] %v1020_v8  ;;  %1064 = vst [vmem:[%s2090_s4 + $0x8] sm:$0xff] %v990_v9 }
 0x589   :  { %1069 = vst [vmem:[%s2090_s4 + $0x30] sm:$0xff] %v1015_v11  ;;  %v1576_v12 = vpop.f32.mrb[34].mxu1  ;;  %1063 = vst [vmem:[%s2090_s4] sm:$0xff] %v985_v5  ;;  %v1567_v13 = vpop.f32.mrb[50].mxu0 }
 0x58a   :  { %v1030_v14 = vadd.f32 %v1576_v12, %v917_v2  ;;  %v1024_v15 = vpop.f32.mrb[35].mxu1  ;;  %v1000_v21 = vadd.f32 %v1567_v13, %v917_v2  ;;  %v994_v23 = vpop.f32.mrb[51].mxu0 }
 0x58b   :  { %v1025_v54 = vadd.f32 %v1024_v15, %v917_v2  ;;  %v995_v55 = vadd.f32 %v994_v23, %v917_v2 }
 0x58c   :  { %1072 = vst [vmem:[%s2090_s4 + $0x48] sm:$0xff] %v1030_v14  ;;  %1066 = vst [vmem:[%s2090_s4 + $0x18] sm:$0xff] %v1000_v21 }
 0x58d   :  { %1071 = vst [vmem:[%s2090_s4 + $0x40] sm:$0xff] %v1025_v54  ;;  %v1579_v56 = vpop.f32.mrb[36].mxu1  ;;  %1065 = vst [vmem:[%s2090_s4 + $0x10] sm:$0xff] %v995_v55  ;;  %v1570_v57 = vpop.f32.mrb[52].mxu0 }
 0x58e   :  { %v1040_v58 = vadd.f32 %v1579_v56, %v917_v2  ;;  %v1034_v59 = vpop.f32.mrb[37].mxu1  ;;  %v1010_v60 = vadd.f32 %v1570_v57, %v917_v2  ;;  %v1004_v61 = vpop.f32.mrb[53].mxu0 }
 0x58f   :  { %v1035_v62 = vadd.f32 %v1034_v59, %v917_v2  ;;  %v1005_v63 = vadd.f32 %v1004_v61, %v917_v2 }
 0x590   :  { %1074 = vst [vmem:[%s2090_s4 + $0x58] sm:$0xff] %v1040_v58  ;;  %1068 = vst [vmem:[%s2090_s4 + $0x28] sm:$0xff] %v1010_v60 }
 0x591   :  { %1073 = vst [vmem:[%s2090_s4 + $0x50] sm:$0xff] %v1035_v62  ;;  %v1582_v0 = vpop.f32.mrb[38].mxu1  ;;  %1067 = vst [vmem:[%s2090_s4 + $0x20] sm:$0xff] %v1005_v63 }
 0x592   :  { %v1050_v16 = vadd.f32 %v1582_v0, %v917_v2  ;;  %v1044_v17 = vpop.f32.mrb[39].mxu1 }
 0x593   :  { %v1045_v18 = vadd.f32 %v1044_v17, %v917_v2 }
 0x594   :  { %1076 = vst [vmem:[%s2090_s4 + $0x68] sm:$0xff] %v1050_v16 }
 0x595   :  { %1075 = vst [vmem:[%s2090_s4 + $0x60] sm:$0xff] %v1045_v18  ;;  %v1585_v20 = vpop.f32.mrb[40].mxu1 }
 0x596   :  { %v1060_v22 = vadd.f32 %v1585_v20, %v917_v2  ;;  %v1054_v25 = vpop.f32.mrb[41].mxu1 }
 0x597   :  { %v1055_v26 = vadd.f32 %v1054_v25, %v917_v2 }
 0x598   :  { %1078 = vst [vmem:[%s2090_s4 + $0x78] sm:$0xff] %v1060_v22 }
 0x599   :  { %1077 = vst [vmem:[%s2090_s4 + $0x70] sm:$0xff] %v1055_v26 }
 0x59a   :  { %1083 = vsyncpa [#allocation3], 1 }

</bundles_post_ra>
